<compile_context>
chip_gen: v5e
topology: v5e:2x2
jax: 0.10.0
libtpu: 0.0.40
codegen_flags: <defaults>
</compile_context>

<pallas_src>
import jax
import jax.numpy as jnp
from jax import lax
from jax.experimental import pallas as pl
from jax.experimental.pallas import tpu as pltpu


def _round_up(x, m):
    return ((x + m - 1) // m) * m


_LANE_CHUNK = 256  # keeps the (2D, chunk) f32 intermediate <= 32 vregs


def _pbm_kernel(x_ref, w1_ref, b1_ref, w2_ref, b2_ref, pi_ref, vf_ref):
    # x_ref:        (N, C, tm)   pixel tile, lane-dense spatial dim
    # w1_ref:       (2D, C)      stacked conv1 weights   (resident, tiny)
    # b1_ref:       (2D, 1)      stacked conv1 biases
    # w2_ref:       (2D, 2D)     block-diagonal conv2 weights
    # b2_ref:       (2D, 1)      stacked conv2 biases
    # pi_ref/vf_ref:(N, D, tm)   output tiles already in NCHW layout
    n_batch, _, tm = x_ref.shape
    d_out = pi_ref.shape[1]

    w1 = w1_ref[...]
    b1 = b1_ref[...]
    w2 = w2_ref[...]
    b2 = b2_ref[...]

    for n in range(n_batch):                          # static unroll over batch
        for off in range(0, tm, _LANE_CHUNK):         # static unroll over lane chunks
            sz = min(_LANE_CHUNK, tm - off)
            x = x_ref[n, :, pl.ds(off, sz)]           # (C, sz)
            # conv1 (both branches at once) on the MXU, f32 accumulate.
            h = jnp.dot(w1, x, preferred_element_type=jnp.float32) + b1
            h = jnp.maximum(h, 0.0)                   # ReLU
            # conv2: block-diagonal (2D, 2D) x (2D, sz) — one MXU dot for both branches.
            y = jnp.dot(w2, h, preferred_element_type=jnp.float32) + b2
            y = jnp.maximum(y, 0.0)                   # ReLU
            pi_ref[n, :, pl.ds(off, sz)] = y[:d_out].astype(pi_ref.dtype)
            vf_ref[n, :, pl.ds(off, sz)] = y[d_out:].astype(vf_ref.dtype)


def pbm_feature_extractor(x, w1_pi, b1_pi, w2_pi, b2_pi,
                          w1_vf, b1_vf, w2_vf, b2_vf,
                          *, tm=512, min_spatial_tiles=2):
    """Forward pass of PbmFeatureExtractor.

    x:            (N, C, H, W) or (C, H, W) float32 (PyTorch NCHW convention)
    w1_*: (D, C)  b1_*: (D,)   -- squeezed 1x1-conv weights/biases, conv #1
    w2_*: (D, D)  b2_*: (D,)   -- conv #2 (module uses latent_dim_pi for both, so D_pi == D_vf)
    returns (policy_latent, value_latent), each (N, D, H, W) (or (D, H, W) if unbatched)
    """
    squeezed = x.ndim == 3
    if squeezed:
        x = x[None]
    N, C, H, W = x.shape
    D = w1_pi.shape[0]
    # The original module wires value_net's second conv with latent_dim_pi, so the
    # latent dims must match for the module itself to be well-formed.
    assert w1_vf.shape == (D, C), "policy/value latent dims must match"
    assert w2_pi.shape == (D, D) and w2_vf.shape == (D, D), "conv2 weights must be (D, D)"
    D2 = 2 * D

    HW = H * W
    HW128 = _round_up(HW, 128)

    # ---- lane-tile selection -------------------------------------------------
    # (a) bound per-step double-buffered output VMEM traffic (~8 MiB),
    # (b) never exceed the (128-padded) row length,
    # (c) keep >= `min_spatial_tiles` grid steps when the spatial extent allows
    #     it, so both v7x TensorCores get work (one extra ~0.35 us step on
    #     single-TC v5e/v6e; pass min_spatial_tiles=1 there to minimize steps).
    itemsize = x.dtype.itemsize
    out_bytes_per_lane = 2 * 2 * N * D * itemsize          # 2 outputs x 2 buffers
    vmem_cap = max(128, ((8 << 20) // out_bytes_per_lane) // 128 * 128)
    tm = max(128, (min(tm, HW128, vmem_cap) // 128) * 128)
    if min_spatial_tiles > 1 and HW128 >= min_spatial_tiles * 128:
        tm = min(tm, _round_up(pl.cdiv(HW128, min_spatial_tiles), 128))
    num_tiles = pl.cdiv(HW, tm)

    # ---- stacked / block-diagonal weights (tiny, one-time) --------------------
    f32 = jnp.float32
    w1_s = jnp.concatenate([w1_pi, w1_vf], axis=0).astype(f32)             # (2D, C)
    b1_s = jnp.concatenate([b1_pi, b1_vf], axis=0).reshape(D2, 1).astype(f32)
    w2_s = jnp.zeros((D2, D2), f32)
    w2_s = w2_s.at[:D, :D].set(w2_pi.astype(f32)).at[D:, D:].set(w2_vf.astype(f32))
    b2_s = jnp.concatenate([b2_pi, b2_vf], axis=0).reshape(D2, 1).astype(f32)

    x3 = x.reshape(N, C, HW)                      # free reshape, stays NCHW (no pad)

    def w_spec(shape):
        return pl.BlockSpec(shape, lambda j: (0,) * len(shape))   # resident params

    cost = pl.CostEstimate(
        flops=2 * N * HW * (D2 * C + D2 * D2),
        transcendentals=0,
        bytes_accessed=(x3.size * itemsize
                        + 2 * N * D * HW * itemsize
                        + (w1_s.size + b1_s.size + w2_s.size + b2_s.size) * 4),
    )

    pi3, vf3 = pl.pallas_call(
        _pbm_kernel,
        out_shape=(jax.ShapeDtypeStruct((N, D, HW), x.dtype),
                   jax.ShapeDtypeStruct((N, D, HW), x.dtype)),
        grid_spec=pltpu.PrefetchScalarGridSpec(
            num_scalar_prefetch=0,
            grid=(num_tiles,),
            in_specs=[
                pl.BlockSpec((N, C, tm), lambda j: (0, 0, j)),   # x tile (N, C, tm)
                w_spec((D2, C)),   # stacked conv1 weights
                w_spec((D2, 1)),   # stacked conv1 biases
                w_spec((D2, D2)),  # block-diagonal conv2 weights
                w_spec((D2, 1)),   # stacked conv2 biases
            ],
            out_specs=[
                pl.BlockSpec((N, D, tm), lambda j: (0, 0, j)),
                pl.BlockSpec((N, D, tm), lambda j: (0, 0, j)),
            ],
        ),
        compiler_params=pltpu.CompilerParams(
            dimension_semantics=("parallel",),
        ),
        cost_estimate=cost,
    )(x3, w1_s, b1_s, w2_s, b2_s)

    pi = pi3.reshape(N, D, H, W)
    vf = vf3.reshape(N, D, H, W)
    if squeezed:
        pi, vf = pi[0], vf[0]
    return pi, vf


if __name__ == "__main__":
    # Small shapes consistent with the module: batch=2, feature_dim=4,
    # spatial 16x16, latent dims (policy == value) = 64.
    N, C, H, W, D = 2, 4, 16, 16, 64

    key = jax.random.PRNGKey(0)
    kx, k1, k2, k3, k4, k5, k6, k7, k8 = jax.random.split(key, 9)

    x = jax.random.normal(kx, (N, C, H, W), dtype=jnp.float32)

    def conv_init(kw, kb, out_ch, in_ch):
        # nn.Conv2d default init (kernel_size=1): uniform +-1/sqrt(fan_in).
        bound = 1.0 / jnp.sqrt(jnp.float32(in_ch))
        w = jax.random.uniform(kw, (out_ch, in_ch), minval=-bound, maxval=bound,
                               dtype=jnp.float32)
        b = jax.random.uniform(kb, (out_ch,), minval=-bound, maxval=bound,
                               dtype=jnp.float32)
        return w, b

    w1_pi, b1_pi = conv_init(k1, k2, D, C)
    w2_pi, b2_pi = conv_init(k3, k4, D, D)
    w1_vf, b1_vf = conv_init(k5, k6, D, C)
    w2_vf, b2_vf = conv_init(k7, k8, D, D)

    pi, vf = pbm_feature_extractor(x, w1_pi, b1_pi, w2_pi, b2_pi,
                                   w1_vf, b1_vf, w2_vf, b2_vf)
    pi, vf = jax.block_until_ready((pi, vf))

    # Reference: plain-JAX 1x1 convs + ReLU in NCHW, full f32 precision.
    def conv1x1(x4, w, b):
        return (jnp.einsum("nchw,dc->ndhw", x4, w,
                           precision=lax.Precision.HIGHEST)
                + b[None, :, None, None])

    ref_pi = jax.nn.relu(conv1x1(jax.nn.relu(conv1x1(x, w1_pi, b1_pi)), w2_pi, b2_pi))
    ref_vf = jax.nn.relu(conv1x1(jax.nn.relu(conv1x1(x, w1_vf, b1_vf)), w2_vf, b2_vf))

    assert pi.shape == (N, D, H, W), pi.shape
    assert vf.shape == (N, D, H, W), vf.shape
    assert jnp.allclose(pi, ref_pi, atol=2e-4, rtol=2e-4)
    assert jnp.allclose(vf, ref_vf, atol=2e-4, rtol=2e-4)

    print("KERNEL_OK")
</pallas_src>

<mosaic_0001>
module attributes {stable_mosaic.version = 11 : i64} {
  func.func @_pbm_kernel(%arg0: i32, %arg1: memref<2x4x128xf32, #tpu.memory_space<vmem>>, %arg2: memref<128x4xf32, #tpu.memory_space<vmem>>, %arg3: memref<128x1xf32, #tpu.memory_space<vmem>>, %arg4: memref<128x128xf32, #tpu.memory_space<vmem>>, %arg5: memref<128x1xf32, #tpu.memory_space<vmem>>, %arg6: memref<2x64x128xf32, #tpu.memory_space<vmem>>, %arg7: memref<2x64x128xf32, #tpu.memory_space<vmem>>) attributes {dimension_semantics = [#tpu.dimension_semantics<parallel>], iteration_bounds = array<i64: 2>, scalar_prefetch = 0 : i64, scratch_operands = 0 : i64, tpu.core_type = #tpu.core_type<tc>, window_params = [{transform_indices = @transform_0, window_bounds = array<i64: 2, 4, 128>}, {pipeline_mode = #tpu.pipeline_mode<synchronous>, transform_indices = @transform_1, window_bounds = array<i64: 128, 4>}, {pipeline_mode = #tpu.pipeline_mode<synchronous>, transform_indices = @transform_2, window_bounds = array<i64: 128, 1>}, {pipeline_mode = #tpu.pipeline_mode<synchronous>, transform_indices = @transform_3, window_bounds = array<i64: 128, 128>}, {pipeline_mode = #tpu.pipeline_mode<synchronous>, transform_indices = @transform_4, window_bounds = array<i64: 128, 1>}, {transform_indices = @transform_5, window_bounds = array<i64: 2, 64, 128>}, {transform_indices = @transform_6, window_bounds = array<i64: 2, 64, 128>}]} {
    %c0 = arith.constant 0 : index
    %c0_0 = arith.constant 0 : index
    %0 = vector.load %arg2[%c0, %c0_0] : memref<128x4xf32, #tpu.memory_space<vmem>>, vector<128x4xf32>
    %c0_1 = arith.constant 0 : index
    %c0_2 = arith.constant 0 : index
    %1 = vector.load %arg3[%c0_1, %c0_2] : memref<128x1xf32, #tpu.memory_space<vmem>>, vector<128x1xf32>
    %c0_3 = arith.constant 0 : index
    %c0_4 = arith.constant 0 : index
    %2 = vector.load %arg4[%c0_3, %c0_4] : memref<128x128xf32, #tpu.memory_space<vmem>>, vector<128x128xf32>
    %c0_5 = arith.constant 0 : index
    %c0_6 = arith.constant 0 : index
    %3 = vector.load %arg5[%c0_5, %c0_6] : memref<128x1xf32, #tpu.memory_space<vmem>>, vector<128x1xf32>
    %c0_7 = arith.constant 0 : index
    %c0_8 = arith.constant 0 : index
    %c0_9 = arith.constant 0 : index
    %4 = vector.load %arg1[%c0_7, %c0_8, %c0_9] : memref<2x4x128xf32, #tpu.memory_space<vmem>>, vector<1x4x128xf32>
    %5 = vector.shape_cast %4 : vector<1x4x128xf32> to vector<4x128xf32>
    %cst = arith.constant dense<0.000000e+00> : vector<128x128xf32>
    %6 = tpu.matmul %0, %5, %cst {dimension_numbers = #tpu.dot_dimension_numbers<[1], [0], [0], [1], [0, 0, 1, 1], [], []>} : vector<128x4xf32>, vector<4x128xf32>, vector<128x128xf32> -> vector<128x128xf32>
    %7 = vector.broadcast %1 : vector<128x1xf32> to vector<128x128xf32>
    %8 = arith.addf %6, %7 : vector<128x128xf32>
    %cst_10 = arith.constant 0.000000e+00 : f32
    %9 = vector.broadcast %cst_10 : f32 to vector<128x128xf32>
    %10 = arith.maximumf %8, %9 : vector<128x128xf32>
    %cst_11 = arith.constant dense<0.000000e+00> : vector<128x128xf32>
    %11 = tpu.matmul %2, %10, %cst_11 {dimension_numbers = #tpu.dot_dimension_numbers<[1], [0], [0], [1], [0, 0, 1, 1], [], []>} : vector<128x128xf32>, vector<128x128xf32>, vector<128x128xf32> -> vector<128x128xf32>
    %12 = vector.broadcast %3 : vector<128x1xf32> to vector<128x128xf32>
    %13 = arith.addf %11, %12 : vector<128x128xf32>
    %cst_12 = arith.constant 0.000000e+00 : f32
    %14 = vector.broadcast %cst_12 : f32 to vector<128x128xf32>
    %15 = arith.maximumf %13, %14 : vector<128x128xf32>
    %16 = vector.extract_strided_slice %15 {offsets = [0, 0], sizes = [64, 128], strides = [1, 1]} : vector<128x128xf32> to vector<64x128xf32>
    %c0_13 = arith.constant 0 : index
    %c0_14 = arith.constant 0 : index
    %c0_15 = arith.constant 0 : index
    %17 = vector.load %arg6[%c0_13, %c0_14, %c0_15] : memref<2x64x128xf32, #tpu.memory_space<vmem>>, vector<1x64x128xf32>
    %18 = vector.shape_cast %17 : vector<1x64x128xf32> to vector<64x128xf32>
    %19 = vector.shape_cast %16 : vector<64x128xf32> to vector<1x64x128xf32>
    tpu.vector_store %arg6[%c0_13, %c0_14, %c0_15], %19 {strides = array<i32>} : memref<2x64x128xf32, #tpu.memory_space<vmem>>, vector<1x64x128xf32>,
    %20 = vector.extract_strided_slice %15 {offsets = [64, 0], sizes = [64, 128], strides = [1, 1]} : vector<128x128xf32> to vector<64x128xf32>
    %c0_16 = arith.constant 0 : index
    %c0_17 = arith.constant 0 : index
    %c0_18 = arith.constant 0 : index
    %21 = vector.load %arg7[%c0_16, %c0_17, %c0_18] : memref<2x64x128xf32, #tpu.memory_space<vmem>>, vector<1x64x128xf32>
    %22 = vector.shape_cast %21 : vector<1x64x128xf32> to vector<64x128xf32>
    %23 = vector.shape_cast %20 : vector<64x128xf32> to vector<1x64x128xf32>
    tpu.vector_store %arg7[%c0_16, %c0_17, %c0_18], %23 {strides = array<i32>} : memref<2x64x128xf32, #tpu.memory_space<vmem>>, vector<1x64x128xf32>,
    %c1 = arith.constant 1 : index
    %c0_19 = arith.constant 0 : index
    %c0_20 = arith.constant 0 : index
    %24 = vector.load %arg1[%c1, %c0_19, %c0_20] : memref<2x4x128xf32, #tpu.memory_space<vmem>>, vector<1x4x128xf32>
    %25 = vector.shape_cast %24 : vector<1x4x128xf32> to vector<4x128xf32>
    %cst_21 = arith.constant dense<0.000000e+00> : vector<128x128xf32>
    %26 = tpu.matmul %0, %25, %cst_21 {dimension_numbers = #tpu.dot_dimension_numbers<[1], [0], [0], [1], [0, 0, 1, 1], [], []>} : vector<128x4xf32>, vector<4x128xf32>, vector<128x128xf32> -> vector<128x128xf32>
    %27 = vector.broadcast %1 : vector<128x1xf32> to vector<128x128xf32>
    %28 = arith.addf %26, %27 : vector<128x128xf32>
    %cst_22 = arith.constant 0.000000e+00 : f32
    %29 = vector.broadcast %cst_22 : f32 to vector<128x128xf32>
    %30 = arith.maximumf %28, %29 : vector<128x128xf32>
    %cst_23 = arith.constant dense<0.000000e+00> : vector<128x128xf32>
    %31 = tpu.matmul %2, %30, %cst_23 {dimension_numbers = #tpu.dot_dimension_numbers<[1], [0], [0], [1], [0, 0, 1, 1], [], []>} : vector<128x128xf32>, vector<128x128xf32>, vector<128x128xf32> -> vector<128x128xf32>
    %32 = vector.broadcast %3 : vector<128x1xf32> to vector<128x128xf32>
    %33 = arith.addf %31, %32 : vector<128x128xf32>
    %cst_24 = arith.constant 0.000000e+00 : f32
    %34 = vector.broadcast %cst_24 : f32 to vector<128x128xf32>
    %35 = arith.maximumf %33, %34 : vector<128x128xf32>
    %36 = vector.extract_strided_slice %35 {offsets = [0, 0], sizes = [64, 128], strides = [1, 1]} : vector<128x128xf32> to vector<64x128xf32>
    %c1_25 = arith.constant 1 : index
    %c0_26 = arith.constant 0 : index
    %c0_27 = arith.constant 0 : index
    %37 = vector.load %arg6[%c1_25, %c0_26, %c0_27] : memref<2x64x128xf32, #tpu.memory_space<vmem>>, vector<1x64x128xf32>
    %38 = vector.shape_cast %37 : vector<1x64x128xf32> to vector<64x128xf32>
    %39 = vector.shape_cast %36 : vector<64x128xf32> to vector<1x64x128xf32>
    tpu.vector_store %arg6[%c1_25, %c0_26, %c0_27], %39 {strides = array<i32>} : memref<2x64x128xf32, #tpu.memory_space<vmem>>, vector<1x64x128xf32>,
    %40 = vector.extract_strided_slice %35 {offsets = [64, 0], sizes = [64, 128], strides = [1, 1]} : vector<128x128xf32> to vector<64x128xf32>
    %c1_28 = arith.constant 1 : index
    %c0_29 = arith.constant 0 : index
    %c0_30 = arith.constant 0 : index
    %41 = vector.load %arg7[%c1_28, %c0_29, %c0_30] : memref<2x64x128xf32, #tpu.memory_space<vmem>>, vector<1x64x128xf32>
    %42 = vector.shape_cast %41 : vector<1x64x128xf32> to vector<64x128xf32>
    %43 = vector.shape_cast %40 : vector<64x128xf32> to vector<1x64x128xf32>
    tpu.vector_store %arg7[%c1_28, %c0_29, %c0_30], %43 {strides = array<i32>} : memref<2x64x128xf32, #tpu.memory_space<vmem>>, vector<1x64x128xf32>,
    return
  }
  func.func @transform_0(%arg0: i32) -> (i32, i32, i32) {
    %c0_i32 = arith.constant 0 : i32
    %c0_i32_0 = arith.constant 0 : i32
    %c0_i32_1 = arith.constant 0 : i32
    return %c0_i32, %c0_i32_0, %arg0 : i32, i32, i32
  }
  func.func @transform_1(%arg0: i32) -> (i32, i32) {
    %c0_i32 = arith.constant 0 : i32
    %c0_i32_0 = arith.constant 0 : i32
    %c0_i32_1 = arith.constant 0 : i32
    return %c0_i32, %c0_i32_0 : i32, i32
  }
  func.func @transform_2(%arg0: i32) -> (i32, i32) {
    %c0_i32 = arith.constant 0 : i32
    %c0_i32_0 = arith.constant 0 : i32
    %c0_i32_1 = arith.constant 0 : i32
    return %c0_i32, %c0_i32_0 : i32, i32
  }
  func.func @transform_3(%arg0: i32) -> (i32, i32) {
    %c0_i32 = arith.constant 0 : i32
    %c0_i32_0 = arith.constant 0 : i32
    %c0_i32_1 = arith.constant 0 : i32
    return %c0_i32, %c0_i32_0 : i32, i32
  }
  func.func @transform_4(%arg0: i32) -> (i32, i32) {
    %c0_i32 = arith.constant 0 : i32
    %c0_i32_0 = arith.constant 0 : i32
    %c0_i32_1 = arith.constant 0 : i32
    return %c0_i32, %c0_i32_0 : i32, i32
  }
  func.func @transform_5(%arg0: i32) -> (i32, i32, i32) {
    %c0_i32 = arith.constant 0 : i32
    %c0_i32_0 = arith.constant 0 : i32
    %c0_i32_1 = arith.constant 0 : i32
    return %c0_i32, %c0_i32_0, %arg0 : i32, i32, i32
  }
  func.func @transform_6(%arg0: i32) -> (i32, i32, i32) {
    %c0_i32 = arith.constant 0 : i32
    %c0_i32_0 = arith.constant 0 : i32
    %c0_i32_1 = arith.constant 0 : i32
    return %c0_i32, %c0_i32_0, %arg0 : i32, i32, i32
  }
}

</mosaic_0001>

<bundles_post_ra>
// kernel: tpu_custom_call.1
= control target key start
LH: loop header
LB: loop body
LE: loop exit
PB: predicated region body
PF: predicated region fallthrough
CT: control target
= control target key end

     0   :  { %12 = vsyncpa [#allocation4], 0  ;;  %s1823_s0 = inlined_call_operand.vmem [shape: f32[2,4,256], index: 0, kind: input, shape index: {}]   ;;  %s1824_s1 = inlined_call_operand.vmem [shape: f32[128,4], index: 1, kind: input, shape index: {}]   ;;  %s1825_s2 = inlined_call_operand.vmem [shape: f32[128,1], index: 2, kind: input, shape index: {}]   ;;  %s1826_s3 = inlined_call_operand.vmem [shape: f32[128,128], index: 3, kind: input, shape index: {}]   ;;  %s1827_s4 = inlined_call_operand.vmem [shape: f32[128,1], index: 4, kind: input, shape index: {}]   ;;  %s1828_s5 = inlined_call_operand.hbm [shape: f32[2,64,256], index: 5, kind: output, shape index: {0}]   ;;  %s1829_s6 = inlined_call_operand.hbm [shape: f32[2,64,256], index: 6, kind: output, shape index: {1}]  }
   0x1   :  { %14 = vsyncpa [#allocation4 + $0x1], 0 }
   0x2   :  { %15 = vsyncpa [#allocation6], 0 }
   0x3   :  { %17 = vsyncpa [#allocation6 + $0x1], 0  ;;  %s1370_s21 = smov 0   ;;  %s1372_s22 = smov 0  }
   0x4   :  { %s1374_s23 = smov 0   ;;  %s1376_s24 = smov 0  }
   0x5 LB: > { %s1085_s25 = sadd.s32 4294967295, %s1329_s24   ;;  %s1086_s26 = sadd.s32 4294967294, %s1329_s24   ;;  %s1329_s24 = sphi %s1376_s24, %s1835_s24   ;;  %s1325_s23 = sphi %s1374_s23, %s1834_s23   ;;  %s1321_s22 = sphi %s1372_s22, %s1833_s22   ;;  %s1317_s21 = sphi %s1370_s21, %s1832_s21  }
   0x6   : > { %s1393_s27 = sadd.s32 1, %s1329_s24   ;;  %s30_s28 = sadd.s32 1, %s1325_s23 }
   0x7   : > { %s27_s29 = ssub.s32 %s1329_s24, %s1393_s27  ;;  %p37_p0 = scmp.ne.s32.totalorder %s1325_s23, %s1321_s22 }
   0x8   : > { %p28_p1 = scmp.eq.s32.totalorder %s27_s29, 0  ;;  %p38_p2 = scmp.eq.s32.totalorder %s1329_s24, 0 }
   0x9   : > { %p151_p3 = scmp.eq.s32.totalorder %s1085_s25, 1  ;;  %p156_p4 = scmp.ne.s32.totalorder %s1321_s22, %s1317_s21 }
   0xa   : > { %s1406_s30 = scalar_select %p28_p1, %s1325_s23, %s30_s28  }
   0xb   : > { %p39_p5 = por %p38_p2, %p37_p0  ;;  %p1408_p6 = por %p151_p3, %p37_p0 }
   0xc   : > { %p157_p7 = scmp.eq.s32.totalorder %s1086_s26, 1  ;;  %p1088_p9 = scmp.ge.s32.totalorder %s1329_s24, 2 }
   0xe   : > { %p1412_p8 = por %p157_p7, %p156_p4  ;;  %211 = sbr.rel (%p1088_p9) target bundleno = 25 (0x19), region = 32 }
  0x13   : > { %214 = sbr.rel (!%p39_p5) target bundleno = 25 (0x19), region = 36  ;;  %s216_s9 = sand.u32 (%p39_p5), 1, %s1325_s23  }
  0x14   : > { %s1090_s10 = sshll.u32 (%p39_p5), %s1329_s24, 2  ;;  %s1089_s11 = sshll.u32 (%p39_p5), %s216_s9, 3 }
  0x15   : > { %s220_s14 = scalar_lea.vmem (%p39_p5), %s1823_s0, %s1090_s10  ;;  %s218_s15 = scalar_lea.vmem (%p39_p5), [#allocation2], %s1089_s11 }
  0x16   : > { %v237_v0 = vld [vmem:[%s220_s14] sm:$0xf] (%p39_p5)  ;;  %v239_v1 = vld [vmem:[%s220_s14 + $0x8] sm:$0xf] (%p39_p5) }
  0x17   : > { %238 = vst [vmem:[%s218_s15] sm:$0xf] (%p39_p5), %v237_v0 }
  0x18   : > { %240 = vst [vmem:[%s218_s15 + $0x4] sm:$0xf] %v239_v1 }
  0x19 PF: > { %p1091_p10 = scmp.ge.s32.totalorder %s1329_s24, 1  ;;  %p267_p11 = scmp.lt.s32.totalorder %s1329_s24, 3 }
  0x1b   : > { %p268_p12 = pnand %p1091_p10, %p267_p11 }
  0x1c   : > { %s1430_s18 = sand.u32 (!%p268_p12), 1, %s1321_s22   ;;  %s1740_s29 = sshll.u32 (!%p268_p12), %s1085_s25, 3 }
  0x1d   : > { %271 = sbr.rel (%p268_p12) target bundleno = 577 (0x241), region = 77  ;;  %s1092_s19 = sshll.u32 (!%p268_p12), %s1430_s18, 3 }
  0x1e   : > { %s276_s9 = scalar_lea.vmem (!%p268_p12), [#allocation2], %s1092_s19  ;;  %s1093_s26 = sshll.u32 (!%p268_p12), %s1430_s18, 7 }
  0x1f   : > { %s1722_s28 = scalar_lea.vmem (!%p268_p12), [#allocation3], %s1093_s26  ;;  %s965_s11 = scalar_lea.hbm (!%p268_p12), %s1828_s5, %s1740_s29 }
  0x20   : > { %s966_s12 = sshll.u32 (!%p268_p12), %s1722_s28, 4  ;;  %s1748_s13 = sshll.u32 (!%p268_p12), %s965_s11, 4  ;;  %s967_s12 = int_to_ptr.vmem [resolvable:$true] %s966_s12  ;;  %s969_s13 = int_to_ptr.hbm [resolvable:$true] %s1748_s13 }
  0x21   : > { %s1752_s25 = scalar_lea.vmem (!%p268_p12), [#allocation5], %s1093_s26  ;;  %s950_s14 = scalar_lea.sflag (!%p268_p12), [#allocation4], %s1430_s18 }
  0x22   : > { %v339_v2 = vld [vmem:[%s1825_s2 + $0x78] sm:$0xff]  ;;  %v1331_v3 = vmov 0   ;;  %vm502_vm0 = vcmask 1043456   ;;  %v337_v4 = vld [vmem:[%s1825_s2 + $0x68] sm:$0xff]  ;;  %v308_v5 = vld [vmem:[%s1824_s1] sm:$0xff]  ;;  %vm453_vm1 = vcmask 31744  }
  0x23   : > { %1232 = vset.pattern.permute.xlu0 %v1331_v3  ;;  %1233 = vset.pattern.permute.xlu1 %v1331_v3  ;;  %v372_v6 = vld [vmem:[%s276_s9] sm:$0xf]  ;;  %v1112_v7 = vld [vmem:[%s276_s9 + $0x4] sm:$0xf]  ;;  %v335_v8 = vld [vmem:[%s1825_s2 + $0x58] sm:$0xff]  ;;  %s1249_s15 = sshra.s32 %s969_s13, 4  ;;  %s1250_s15 = int_to_ptr.hbm [resolvable:$true] %s1249_s15 }
  0x24   : > { %450 = vperm.xlu0 %1232, %v339_v2   ;;  %440 = vperm.xlu1 %1233, %v337_v4   ;;  %v338_v9 = vld [vmem:[%s1825_s2 + $0x70] sm:$0xff]  ;;  %v336_v10 = vld [vmem:[%s1825_s2 + $0x60] sm:$0xff]  ;;  %v309_v11 = vld [vmem:[%s1824_s1 + $0x8] sm:$0xff]  ;;  %s1251_s16 = scalar_lea.hbm %s1250_s15, 128  ;;  %s1255_s20 = scalar_lea.hbm %s1828_s5, 256 }
  0x25   : > { %1234 = vset.pattern.permute.xlu2 %v1331_v3  ;;  %1095 = vmatpush.msk.msra.mxu0 %vm502_vm0, %v372_v6  ;;  %v334_v12 = vld [vmem:[%s1825_s2 + $0x50] sm:$0xff]  ;;  %v333_v13 = vld [vmem:[%s1825_s2 + $0x48] sm:$0xff]  ;;  %v332_v14 = vld [vmem:[%s1825_s2 + $0x40] sm:$0xff]  ;;  %p1252_p13 = scmp.ne.s32.totalorder %s1250_s15, %s1251_s16  ;;  %p1256_p2 = scmp.lt.s32.totalorder %s1250_s15, %s1828_s5 }
  0x26   : > { %1113 = vmatpush.msk.msra.mxu2 %vm502_vm0, %v1112_v7  ;;  %1096 = vmatmul.msk.f32.vlgmr.msra.gmra.mxu0 %vm453_vm1, %v308_v5  ;;  %v310_v15 = vld [vmem:[%s1824_s1 + $0x10] sm:$0xff]  ;;  %v331_v16 = vld [vmem:[%s1825_s2 + $0x38] sm:$0xff]  ;;  %v329_v18 = vld [vmem:[%s1825_s2 + $0x28] sm:$0xff]  ;;  %p1257_p3 = scmp.lt.s32.totalorder %s1255_s20, %s1251_s16 }
  0x27   : > { %1114 = vmatmul.msk.f32.vlgmr.msra.gmra.mxu2 %vm453_vm1, %v308_v5  ;;  %430 = vperm.xlu2 %1234, %v335_v8   ;;  %v330_v17 = vld [vmem:[%s1825_s2 + $0x30] sm:$0xff]  ;;  %v311_v19 = vld [vmem:[%s1824_s1 + $0x18] sm:$0xff]  ;;  %v328_v20 = vld [vmem:[%s1825_s2 + $0x20] sm:$0xff]  ;;  %p1253_p0 = pnand %p1252_p13, %p1408_p6 }
  0x28   : > { %v327_v21 = vld [vmem:[%s1825_s2 + $0x18] sm:$0xff]  ;;  %v326_v22 = vld [vmem:[%s1825_s2 + $0x10] sm:$0xff]  ;;  %v312_v23 = vld [vmem:[%s1824_s1 + $0x20] sm:$0xff]  ;;  %p1258_p4 = por %p1257_p3, %p1256_p2 }
  0x29   : > { %v325_v24 = vld [vmem:[%s1825_s2 + $0x8] sm:$0xff]  ;;  %v324_v25 = vld [vmem:[%s1825_s2] sm:$0xff]  ;;  %v314_v27 = vld [vmem:[%s1824_s1 + $0x30] sm:$0xff]  ;;  %p1254_p1 = pneg %p1253_p0 }
  0x2a   : > { %v313_v26 = vld [vmem:[%s1824_s1 + $0x28] sm:$0xff]  ;;  %v315_v28 = vld [vmem:[%s1824_s1 + $0x38] sm:$0xff]  ;;  %v356_v29 = vld [vmem:[%s1827_s4] sm:$0xff] }
  0x2b   : > { %v358_v30 = vld [vmem:[%s1827_s4 + $0x10] sm:$0xff]  ;;  %v316_v31 = vld [vmem:[%s1824_s1 + $0x40] sm:$0xff]  ;;  %v359_v32 = vld [vmem:[%s1827_s4 + $0x18] sm:$0xff]  ;;  %p1259_p5 = pnand %p1258_p4, %p1254_p1 }
  0x2c   : > { %445 = vperm.xlu0 %1232, %v338_v9   ;;  %435 = vperm.xlu1 %1233, %v336_v10   ;;  %v361_v33 = vld [vmem:[%s1827_s4 + $0x28] sm:$0xff]  ;;  %v362_v35 = vld [vmem:[%s1827_s4 + $0x30] sm:$0xff]  ;;  %v364_v37 = vld [vmem:[%s1827_s4 + $0x40] sm:$0xff] }
  0x2d   : > { %v317_v34 = vld [vmem:[%s1824_s1 + $0x48] sm:$0xff]  ;;  %v318_v36 = vld [vmem:[%s1824_s1 + $0x50] sm:$0xff]  ;;  %v319_v39 = vld [vmem:[%s1824_s1 + $0x58] sm:$0xff] }
  0x2e   : > { %1097 = vmatmul.msk.f32.gmra.mxu0 %vm453_vm1, %v309_v11  ;;  %v365_v38 = vld [vmem:[%s1827_s4 + $0x48] sm:$0xff]  ;;  %v367_v40 = vld [vmem:[%s1827_s4 + $0x58] sm:$0xff]  ;;  %v368_v41 = vld [vmem:[%s1827_s4 + $0x60] sm:$0xff] }
  0x2f   : > { %1115 = vmatmul.msk.f32.gmra.mxu2 %vm453_vm1, %v309_v11  ;;  %425 = vperm.xlu2 %1234, %v334_v12   ;;  %v357_v42 = vld [vmem:[%s1827_s4 + $0x8] sm:$0xff]  ;;  %v320_v43 = vld [vmem:[%s1824_s1 + $0x60] sm:$0xff]  ;;  %v370_v44 = vld [vmem:[%s1827_s4 + $0x70] sm:$0xff] }
  0x30   : > { %v371_v45 = vld [vmem:[%s1827_s4 + $0x78] sm:$0xff]  ;;  %v360_v46 = vld [vmem:[%s1827_s4 + $0x20] sm:$0xff]  ;;  %v321_v47 = vld [vmem:[%s1824_s1 + $0x68] sm:$0xff] }
  0x31   : > { %v363_v48 = vld [vmem:[%s1827_s4 + $0x38] sm:$0xff]  ;;  %v322_v49 = vld [vmem:[%s1824_s1 + $0x70] sm:$0xff]  ;;  %v369_v52 = vld [vmem:[%s1827_s4 + $0x68] sm:$0xff] }
  0x32   : > { %v366_v50 = vld [vmem:[%s1827_s4 + $0x50] sm:$0xff]  ;;  %v323_v51 = vld [vmem:[%s1824_s1 + $0x78] sm:$0xff] }
  0x34   : > { %420 = vperm.xlu0 %1232, %v333_v13   ;;  %415 = vperm.xlu1 %1233, %v332_v14  }
  0x36   : > { %1098 = vmatmul.msk.f32.gmra.mxu0 %vm453_vm1, %v310_v15 }
  0x37   : > { %1116 = vmatmul.msk.f32.gmra.mxu2 %vm453_vm1, %v310_v15  ;;  %410 = vperm.xlu2 %1234, %v331_v16  }
  0x3c   : > { %405 = vperm.xlu0 %1232, %v330_v17   ;;  %400 = vperm.xlu1 %1233, %v329_v18  }
  0x3e   : > { %1099 = vmatmul.msk.f32.gmra.mxu0 %vm453_vm1, %v311_v19 }
  0x3f   : > { %1117 = vmatmul.msk.f32.gmra.mxu2 %vm453_vm1, %v311_v19  ;;  %395 = vperm.xlu2 %1234, %v328_v20  }
  0x44   : > { %390 = vperm.xlu0 %1232, %v327_v21   ;;  %385 = vperm.xlu1 %1233, %v326_v22  }
  0x46   : > { %1100 = vmatmul.msk.f32.gmra.mxu0 %vm453_vm1, %v312_v23 }
  0x47   : > { %1118 = vmatmul.msk.f32.gmra.mxu2 %vm453_vm1, %v312_v23  ;;  %380 = vperm.xlu2 %1234, %v325_v24  }
  0x4c   : > { %375 = vperm.xlu0 %1232, %v324_v25   ;;  %589 = vperm.xlu1 %1233, %v356_v29  }
  0x4e   : > { %1101 = vmatmul.msk.f32.gmra.mxu0 %vm453_vm1, %v313_v26 }
  0x4f   : > { %1119 = vmatmul.msk.f32.gmra.mxu2 %vm453_vm1, %v313_v26  ;;  %594 = vperm.xlu2 %1234, %v357_v42  }
  0x54   : > { %599 = vperm.xlu0 %1232, %v358_v30   ;;  %604 = vperm.xlu1 %1233, %v359_v32  }
  0x56   : > { %1102 = vmatmul.msk.f32.gmra.mxu0 %vm453_vm1, %v314_v27 }
  0x57   : > { %1120 = vmatmul.msk.f32.gmra.mxu2 %vm453_vm1, %v314_v27  ;;  %609 = vperm.xlu2 %1234, %v360_v46  }
  0x5c   : > { %614 = vperm.xlu0 %1232, %v361_v33   ;;  %619 = vperm.xlu1 %1233, %v362_v35  }
  0x5e   : > { %1103 = vmatmul.msk.f32.gmra.mxu0 %vm453_vm1, %v315_v28 }
  0x5f   : > { %1121 = vmatmul.msk.f32.gmra.mxu2 %vm453_vm1, %v315_v28  ;;  %624 = vperm.xlu2 %1234, %v363_v48  }
  0x64   : > { %629 = vperm.xlu0 %1232, %v364_v37   ;;  %634 = vperm.xlu1 %1233, %v365_v38  }
  0x66   : > { %1104 = vmatmul.msk.f32.gmra.mxu0 %vm453_vm1, %v316_v31 }
  0x67   : > { %1122 = vmatmul.msk.f32.gmra.mxu2 %vm453_vm1, %v316_v31  ;;  %639 = vperm.xlu2 %1234, %v366_v50  }
  0x6c   : > { %644 = vperm.xlu0 %1232, %v367_v40   ;;  %649 = vperm.xlu1 %1233, %v368_v41  }
  0x6e   : > { %1105 = vmatmul.msk.f32.gmra.mxu0 %vm453_vm1, %v317_v34 }
  0x6f   : > { %1123 = vmatmul.msk.f32.gmra.mxu2 %vm453_vm1, %v317_v34  ;;  %654 = vperm.xlu2 %1234, %v369_v52  }
  0x74   : > { %659 = vperm.xlu0 %1232, %v370_v44   ;;  %664 = vperm.xlu1 %1233, %v371_v45  }
  0x76   : > { %1106 = vmatmul.msk.f32.gmra.mxu0 %vm453_vm1, %v318_v36 }
  0x77   : > { %1124 = vmatmul.msk.f32.gmra.mxu2 %vm453_vm1, %v318_v36 }
  0x7e   : > { %1107 = vmatmul.msk.f32.gmra.mxu0 %vm453_vm1, %v319_v39 }
  0x7f   : > { %1125 = vmatmul.msk.f32.gmra.mxu2 %vm453_vm1, %v319_v39 }
  0x81   : > { %v431_v18 = vpop.permute.xlu2 %430 }
  0x86   : > { %1108 = vmatmul.msk.f32.gmra.mxu0 %vm453_vm1, %v320_v43 }
  0x87   : > { %1126 = vmatmul.msk.f32.gmra.mxu2 %vm453_vm1, %v320_v43 }
  0x89   : > { %v426_v23 = vpop.permute.xlu2 %425 }
  0x8e   : > { %1109 = vmatmul.msk.f32.gmra.mxu0 %vm453_vm1, %v321_v47 }
  0x8f   : > { %1127 = vmatmul.msk.f32.gmra.mxu2 %vm453_vm1, %v321_v47 }
  0x91   : > { %v1644_v32 = vpop.permute.xlu2 %410 }
  0x96   : > { %1110 = vmatmul.msk.f32.gmra.mxu0 %vm453_vm1, %v322_v49  ;;  %v451_v13 = vpop.permute.xlu0 %450  ;;  %v441_v16 = vpop.permute.xlu1 %440 }
  0x97   : > { %1128 = vmatmul.msk.f32.gmra.mxu2 %vm453_vm1, %v322_v49 }
  0x9e   : > { %1111 = vmatmul.msk.f32.gmra.mxu0 %vm453_vm1, %v323_v51  ;;  %v446_v19 = vpop.permute.xlu0 %445  ;;  %v436_v22 = vpop.permute.xlu1 %435 }
  0x9f   : > { %1129 = vmatmul.msk.f32.gmra.mxu2 %vm453_vm1, %v323_v51 }
  0xa3   : > { %v1606_v53 = vpop.f32.mrf.mxu0 }
  0xa6   : > { %v421_v24 = vpop.permute.xlu0 %420  ;;  %v416_v31 = vpop.permute.xlu1 %415 }
  0xaa   : > { %v1608_v54 = vpop.f32.mrf.mxu2 }
  0xab   : > { %v1610_v55 = vpop.f32.mrf.mxu0 }
  0xae   : > { %v1646_v35 = vpop.permute.xlu0 %405  ;;  %v401_v51 = vpop.permute.xlu1 %400 }
  0xb2   : > { %v1612_v56 = vpop.f32.mrf.mxu2 }
  0xb3   : > { %v1614_v57 = vpop.f32.mrf.mxu0 }
  0xba   : > { %v1616_v58 = vpop.f32.mrf.mxu2 }
  0xbb   : > { %v1618_v59 = vpop.f32.mrf.mxu0 }
  0xc2   : > { %v1620_v60 = vpop.f32.mrf.mxu2 }
  0xc3   : > { %v1622_v61 = vpop.f32.mrf.mxu0 }
  0xca   : > { %v1624_v62 = vpop.f32.mrf.mxu2 }
  0xcb   : > { %v1626_v63 = vpop.f32.mrf.mxu0 }
  0xd2   : > { %v1628_v0 = vpop.f32.mrf.mxu2 }
  0xd3   : > { %v1630_v1 = vpop.f32.mrf.mxu0 }
  0xda   : > { %v1632_v2 = vpop.f32.mrf.mxu2 }
  0xdb   : > { %v1634_v3 = vpop.f32.mrf.mxu0 }
  0xe2   : > { %v1636_v4 = vpop.f32.mrf.mxu2 }
  0xe3   : > { %v547_v5 = vpop.f32.mrf.mxu0 }
  0xe4   : > { %v548_v49 = vadd.f32 %v547_v5, %v416_v31  ;;  %v542_v5 = vadd.f32 %v1630_v1, %v1646_v35 }
  0xea   : > { %v1638_v6 = vpop.f32.mrf.mxu2 }
  0xeb   : > { %v550_v7 = vpop.f32.mrf.mxu0 }
  0xec   : > { %v551_v45 = vadd.f32 %v550_v7, %v421_v24 }
  0xee   : > { %v580_v7 = vmax.f32 %v551_v45, 0.0  ;;  %v348_v45 = vld [vmem:[%s1826_s3 + $0x40] sm:$0xff] }
  0xf2   : > { %v1640_v8 = vpop.f32.mrf.mxu2 }
  0xf3   : > { %v553_v9 = vpop.f32.mrf.mxu0 }
  0xf4   : > { %v554_v41 = vadd.f32 %v553_v9, %v426_v23 }
  0xf6   : > { %v581_v50 = vmax.f32 %v554_v41, 0.0  ;;  %v344_v41 = vld [vmem:[%s1826_s3 + $0x20] sm:$0xff] }
  0xfa   : > { %v1642_v10 = vpop.f32.mrf.mxu2 }
  0xfb   : > { %v556_v11 = vpop.f32.mrf.mxu0 }
  0xfc   : > { %v557_v37 = vadd.f32 %v556_v11, %v431_v18  ;;  %v545_v11 = vadd.f32 %v1634_v3, %v1644_v32  ;;  %v539_v3 = vadd.f32 %v1626_v63, %v401_v51 }
  0xfe   : > { %v582_v46 = vmax.f32 %v557_v37, 0.0  ;;  %v341_v37 = vld [vmem:[%s1826_s3 + $0x8] sm:$0xff] }
 0x102   : > { %v819_v12 = vpop.f32.mrf.mxu2 }
 0x103   : > { %v559_v14 = vpop.f32.mrf.mxu0  ;;  %v820_v52 = vadd.f32 %v819_v12, %v431_v18  ;;  %v579_v12 = vmax.f32 %v548_v49, 0.0  ;;  %v352_v49 = vld [vmem:[%s1826_s3 + $0x60] sm:$0xff] }
 0x104   : > { %v560_v33 = vadd.f32 %v559_v14, %v436_v22  ;;  %v391_v14 = vpop.permute.xlu0 %390 }
 0x105   : > { %v845_v18 = vmax.f32 %v820_v52, 0.0  ;;  %v533_v63 = vadd.f32 %v1618_v59, %v391_v14  ;;  %v355_v52 = vld [vmem:[%s1826_s3 + $0x78] sm:$0xff] }
 0x106   : > { %v583_v42 = vmax.f32 %v560_v33, 0.0 }
 0x10a   : > { %v822_v15 = vpop.f32.mrf.mxu2 }
 0x10b   : > { %v562_v17 = vpop.f32.mrf.mxu0  ;;  %v823_v47 = vadd.f32 %v822_v15, %v436_v22  ;;  %v817_v15 = vadd.f32 %v1642_v10, %v426_v23  ;;  %v811_v10 = vadd.f32 %v1638_v6, %v416_v31  ;;  %v576_v23 = vmax.f32 %v539_v3, 0.0  ;;  %v386_v6 = vpop.permute.xlu1 %385 }
 0x10c   : > { %v563_v29 = vadd.f32 %v562_v17, %v441_v16  ;;  %v814_v17 = vadd.f32 %v1640_v8, %v421_v24  ;;  %v808_v8 = vadd.f32 %v1636_v4, %v1644_v32  ;;  %v805_v24 = vadd.f32 %v1632_v2, %v1646_v35 }
 0x10e   : > { %v584_v38 = vmax.f32 %v563_v29, 0.0  ;;  %v843_v22 = vmax.f32 %v814_v17, 0.0  ;;  %v841_v59 = vmax.f32 %v808_v8, 0.0  ;;  %v840_v31 = vmax.f32 %v805_v24, 0.0 }
 0x112   : > { %v825_v20 = vpop.f32.mrf.mxu2 }
 0x113   : > { %v565_v21 = vpop.f32.mrf.mxu0  ;;  %v826_v44 = vadd.f32 %v825_v20, %v441_v16  ;;  %v846_v16 = vmax.f32 %v823_v47, 0.0  ;;  %v844_v20 = vmax.f32 %v817_v15, 0.0  ;;  %v350_v47 = vld [vmem:[%s1826_s3 + $0x50] sm:$0xff] }
 0x114   : > { %v566_v27 = vadd.f32 %v565_v21, %v446_v19  ;;  %v577_v21 = vmax.f32 %v542_v5, 0.0 }
 0x115   : > { %v847_v9 = vmax.f32 %v826_v44, 0.0  ;;  %v347_v44 = vld [vmem:[%s1826_s3 + $0x38] sm:$0xff] }
 0x116   : > { %v585_v34 = vmax.f32 %v566_v27, 0.0  ;;  %v376_v27 = vpop.permute.xlu0 %375 }
 0x11a   : > { %v828_v25 = vpop.f32.mrf.mxu2 }
 0x11b   : > { %v568_v26 = vpop.f32.mrf.mxu0  ;;  %v829_v40 = vadd.f32 %v828_v25, %v446_v19  ;;  %v578_v19 = vmax.f32 %v545_v11, 0.0  ;;  %v842_v25 = vmax.f32 %v811_v10, 0.0 }
 0x11c   : > { %v569_v28 = vadd.f32 %v568_v26, %v451_v13 }
 0x11d   : > { %v848_v48 = vmax.f32 %v829_v40, 0.0  ;;  %v342_v40 = vld [vmem:[%s1826_s3 + $0x10] sm:$0xff] }
 0x11e   : > { %v586_v30 = vmax.f32 %v569_v28, 0.0  ;;  %v802_v28 = vadd.f32 %v1628_v0, %v401_v51  ;;  %v796_v0 = vadd.f32 %v1620_v60, %v391_v14  ;;  %v340_v60 = vld [vmem:[%s1826_s3] sm:$0xff]  ;;  %v354_v51 = vld [vmem:[%s1826_s3 + $0x70] sm:$0xff] }
 0x120   : > { %667 = vmatpush.msrb.mxu0 %v586_v30  ;;  %1152 = vmatpush.msra.mxu1 %v586_v30  ;;  %v574_v30 = vmax.f32 %v533_v63, 0.0  ;;  %v839_v33 = vmax.f32 %v802_v28, 0.0 }
 0x122   : > { %v831_v36 = vpop.f32.mrf.mxu2  ;;  %668 = vmatpush.msrb.mxu0 %v585_v34  ;;  %1153 = vmatpush.msra.mxu1 %v585_v34  ;;  %v793_v34 = vadd.f32 %v1616_v58, %v386_v6 }
 0x123   : > { %v832_v39 = vadd.f32 %v831_v36, %v451_v13  ;;  %v396_v13 = vpop.permute.xlu2 %395  ;;  %v837_v36 = vmax.f32 %v796_v0, 0.0 }
 0x124   : > { %669 = vmatpush.msrb.mxu0 %v584_v38  ;;  %1154 = vmatpush.msra.mxu1 %v584_v38  ;;  %v536_v1 = vadd.f32 %v1622_v61, %v396_v13  ;;  %v530_v61 = vadd.f32 %v1614_v57, %v386_v6  ;;  %v799_v2 = vadd.f32 %v1624_v62, %v396_v13  ;;  %v836_v58 = vmax.f32 %v793_v34, 0.0 }
 0x125   : > { %v849_v43 = vmax.f32 %v832_v39, 0.0  ;;  %v524_v57 = vadd.f32 %v1606_v53, %v376_v27  ;;  %v787_v38 = vadd.f32 %v1608_v54, %v376_v27  ;;  %v343_v54 = vld [vmem:[%s1826_s3 + $0x18] sm:$0xff] }
 0x126   : > { %670 = vmatpush.msrb.mxu0 %v583_v42  ;;  %1155 = vmatpush.msra.mxu1 %v583_v42  ;;  %v575_v26 = vmax.f32 %v536_v1, 0.0  ;;  %v573_v32 = vmax.f32 %v530_v61, 0.0  ;;  %v838_v35 = vmax.f32 %v799_v2, 0.0  ;;  %v345_v42 = vld [vmem:[%s1826_s3 + $0x28] sm:$0xff] }
 0x127   : > { %850 = vmatpush.msrb.mxu2 %v849_v43  ;;  %1168 = vmatpush.msra.mxu3 %v849_v43  ;;  %v571_v62 = vmax.f32 %v524_v57, 0.0  ;;  %v834_v39 = vmax.f32 %v787_v38, 0.0  ;;  %v346_v43 = vld [vmem:[%s1826_s3 + $0x30] sm:$0xff] }
 0x128   : > { %671 = vmatpush.msrb.mxu0 %v582_v46  ;;  %1156 = vmatpush.msra.mxu1 %v582_v46  ;;  %v349_v46 = vld [vmem:[%s1826_s3 + $0x48] sm:$0xff] }
 0x129   : > { %851 = vmatpush.msrb.mxu2 %v848_v48  ;;  %1169 = vmatpush.msra.mxu3 %v848_v48  ;;  %v351_v48 = vld [vmem:[%s1826_s3 + $0x58] sm:$0xff] }
 0x12a   : > { %672 = vmatpush.msrb.mxu0 %v581_v50  ;;  %1157 = vmatpush.msra.mxu1 %v581_v50  ;;  %v353_v50 = vld [vmem:[%s1826_s3 + $0x68] sm:$0xff] }
 0x12b   : > { %852 = vmatpush.msrb.mxu2 %v847_v9  ;;  %1170 = vmatpush.msra.mxu3 %v847_v9  ;;  %v381_v4 = vpop.permute.xlu2 %380  ;;  %v590_v9 = vpop.permute.xlu1 %589 }
 0x12c   : > { %673 = vmatpush.msrb.mxu0 %v580_v7  ;;  %1158 = vmatpush.msra.mxu1 %v580_v7  ;;  %v527_v29 = vadd.f32 %v1610_v55, %v381_v4  ;;  %v790_v53 = vadd.f32 %v1612_v56, %v381_v4 }
 0x12d   : > { %853 = vmatpush.msrb.mxu2 %v846_v16  ;;  %1171 = vmatpush.msra.mxu3 %v846_v16 }
 0x12e   : > { %674 = vmatpush.msrb.mxu0 %v579_v12  ;;  %1159 = vmatpush.msra.mxu1 %v579_v12  ;;  %v572_v55 = vmax.f32 %v527_v29, 0.0  ;;  %v835_v56 = vmax.f32 %v790_v53, 0.0  ;;  %v600_v12 = vpop.permute.xlu0 %599 }
 0x12f   : > { %854 = vmatpush.msrb.mxu2 %v845_v18  ;;  %1172 = vmatpush.msra.mxu3 %v845_v18 }
 0x130   : > { %675 = vmatpush.msrb.mxu0 %v578_v19  ;;  %1160 = vmatpush.msra.mxu1 %v578_v19 }
 0x131   : > { %855 = vmatpush.msrb.mxu2 %v844_v20  ;;  %1173 = vmatpush.msra.mxu3 %v844_v20 }
 0x132   : > { %676 = vmatpush.msrb.mxu0 %v577_v21  ;;  %1161 = vmatpush.msra.mxu1 %v577_v21 }
 0x133   : > { %856 = vmatpush.msrb.mxu2 %v843_v22  ;;  %1174 = vmatpush.msra.mxu3 %v843_v22  ;;  %v595_v11 = vpop.permute.xlu2 %594  ;;  %v605_v22 = vpop.permute.xlu1 %604 }
 0x134   : > { %677 = vmatpush.msrb.mxu0 %v576_v23  ;;  %1162 = vmatpush.msra.mxu1 %v576_v23 }
 0x135   : > { %857 = vmatpush.msrb.mxu2 %v842_v25  ;;  %1175 = vmatpush.msra.mxu3 %v842_v25 }
 0x136   : > { %678 = vmatpush.msrb.mxu0 %v575_v26  ;;  %1163 = vmatpush.msra.mxu1 %v575_v26  ;;  %v615_v2 = vpop.permute.xlu0 %614 }
 0x137   : > { %858 = vmatpush.msrb.mxu2 %v841_v59  ;;  %1176 = vmatpush.msra.mxu3 %v841_v59 }
 0x138   : > { %679 = vmatpush.msrb.mxu0 %v574_v30  ;;  %1164 = vmatpush.msra.mxu1 %v574_v30 }
 0x139   : > { %859 = vmatpush.msrb.mxu2 %v840_v31  ;;  %1177 = vmatpush.msra.mxu3 %v840_v31 }
 0x13a   : > { %680 = vmatpush.msrb.mxu0 %v573_v32  ;;  %1165 = vmatpush.msra.mxu1 %v573_v32 }
 0x13b   : > { %860 = vmatpush.msrb.mxu2 %v839_v33  ;;  %1178 = vmatpush.msra.mxu3 %v839_v33  ;;  %v610_v26 = vpop.permute.xlu2 %609  ;;  %v620_v34 = vpop.permute.xlu1 %619 }
 0x13c   : > { %681 = vmatpush.msrb.mxu0 %v572_v55  ;;  %1166 = vmatpush.msra.mxu1 %v572_v55 }
 0x13d   : > { %861 = vmatpush.msrb.mxu2 %v838_v35  ;;  %1179 = vmatpush.msra.mxu3 %v838_v35 }
 0x13e   : > { %682 = vmatpush.msrb.mxu0 %v571_v62  ;;  %1167 = vmatpush.msra.mxu1 %v571_v62 }
 0x13f   : > { %862 = vmatpush.msrb.mxu2 %v837_v36  ;;  %1180 = vmatpush.msra.mxu3 %v837_v36 }
 0x140   : > { %683 = vmatmul.f32.vlgmr.msrb.gmra.mxu0 %v340_v60  ;;  %686 = vmatmul.f32.vlgmr.msra.gmra.mxu1 %v341_v37 }
 0x141   : > { %863 = vmatpush.msrb.mxu2 %v836_v58  ;;  %1181 = vmatpush.msra.mxu3 %v836_v58 }
 0x143   : > { %864 = vmatpush.msrb.mxu2 %v835_v56  ;;  %1182 = vmatpush.msra.mxu3 %v835_v56  ;;  %v625_v58 = vpop.permute.xlu2 %624 }
 0x145   : > { %865 = vmatpush.msrb.mxu2 %v834_v39  ;;  %1183 = vmatpush.msra.mxu3 %v834_v39 }
 0x146   : > { %866 = vmatmul.f32.vlgmr.msrb.gmra.mxu2 %v340_v60  ;;  %869 = vmatmul.f32.vlgmr.msra.gmra.mxu3 %v341_v37 }
 0x148   : > { %689 = vmatmul.f32.gmra.mxu1 %v342_v40 }
 0x14e   : > { %872 = vmatmul.f32.gmra.mxu3 %v342_v40 }
 0x150   : > { %692 = vmatmul.f32.gmra.mxu1 %v343_v54 }
 0x156   : > { %875 = vmatmul.f32.gmra.mxu3 %v343_v54 }
 0x158   : > { %695 = vmatmul.f32.gmra.mxu1 %v344_v41 }
 0x15e   : > { %878 = vmatmul.f32.gmra.mxu3 %v344_v41 }
 0x160   : > { %698 = vmatmul.f32.gmra.mxu1 %v345_v42 }
 0x166   : > { %881 = vmatmul.f32.gmra.mxu3 %v345_v42  ;;  %v630_v42 = vpop.permute.xlu0 %629 }
 0x168   : > { %701 = vmatmul.f32.gmra.mxu1 %v346_v43 }
 0x16e   : > { %884 = vmatmul.f32.gmra.mxu3 %v346_v43 }
 0x170   : > { %704 = vmatmul.f32.gmra.mxu1 %v347_v44 }
 0x176   : > { %887 = vmatmul.f32.gmra.mxu3 %v347_v44 }
 0x178   : > { %707 = vmatmul.f32.gmra.mxu1 %v348_v45 }
 0x17e   : > { %890 = vmatmul.f32.gmra.mxu3 %v348_v45 }
 0x180   : > { %710 = vmatmul.f32.gmra.mxu1 %v349_v46 }
 0x186   : > { %893 = vmatmul.f32.gmra.mxu3 %v349_v46 }
 0x188   : > { %713 = vmatmul.f32.gmra.mxu1 %v350_v47 }
 0x18e   : > { %896 = vmatmul.f32.gmra.mxu3 %v350_v47 }
 0x190   : > { %716 = vmatmul.f32.gmra.mxu1 %v351_v48 }
 0x196   : > { %899 = vmatmul.f32.gmra.mxu3 %v351_v48 }
 0x198   : > { %719 = vmatmul.f32.gmra.mxu1 %v352_v49 }
 0x19e   : > { %902 = vmatmul.f32.gmra.mxu3 %v352_v49  ;;  %v635_v49 = vpop.permute.xlu1 %634 }
 0x1a0   : > { %722 = vmatmul.f32.gmra.mxu1 %v353_v50 }
 0x1a6   : > { %905 = vmatmul.f32.gmra.mxu3 %v353_v50 }
 0x1a8   : > { %725 = vmatmul.f32.gmra.mxu1 %v354_v51 }
 0x1ae   : > { %908 = vmatmul.f32.gmra.mxu3 %v354_v51 }
 0x1b0   : > { %728 = vmatmul.f32.gmra.mxu1 %v355_v52 }
 0x1b6   : > { %911 = vmatmul.f32.gmra.mxu3 %v355_v52 }
 0x1bd   : > { %v684_v7 = vpop.f32.mrf.mxu0  ;;  %v687_v13 = vpop.f32.mrf.mxu1 }
 0x1be   : > { %v685_v14 = vadd.f32 %v684_v7, %v590_v9  ;;  %v688_v15 = vadd.f32 %v687_v13, %v595_v11 }
 0x1c0   : > { %v732_v16 = vmax.f32 %v685_v14, 0.0  ;;  %v733_v5 = vmax.f32 %v688_v15, 0.0 }
 0x1c2   : > { %748 = vst [vmem:[%s1722_s28] sm:$0xff] %v732_v16 }
 0x1c3   : > { %749 = vst [vmem:[%s1722_s28 + $0x8] sm:$0xff] %v733_v5 }
 0x1c5   : > { %v690_v17 = vpop.f32.mrf.mxu1 }
 0x1c6   : > { %v691_v18 = vadd.f32 %v690_v17, %v600_v12 }
 0x1c8   : > { %v734_v3 = vmax.f32 %v691_v18, 0.0 }
 0x1c9   : > { %v867_v19 = vpop.f32.mrf.mxu2  ;;  %v870_v10 = vpop.f32.mrf.mxu3 }
 0x1ca   : > { %750 = vst [vmem:[%s1722_s28 + $0x10] sm:$0xff] %v734_v3  ;;  %v868_v20 = vadd.f32 %v867_v19, %v590_v9  ;;  %v871_v1 = vadd.f32 %v870_v10, %v595_v11 }
 0x1cc   : > { %v915_v21 = vmax.f32 %v868_v20, 0.0  ;;  %v916_v8 = vmax.f32 %v871_v1, 0.0 }
 0x1cd   : > { %v693_v63 = vpop.f32.mrf.mxu1 }
 0x1ce   : > { %1130 = vst [vmem:[%s1722_s28 + $0x40] sm:$0xff] %v915_v21  ;;  %v694_v23 = vadd.f32 %v693_v63, %v605_v22 }
 0x1cf   : > { %1131 = vst [vmem:[%s1722_s28 + $0x48] sm:$0xff] %v916_v8 }
 0x1d0   : > { %v735_v6 = vmax.f32 %v694_v23, 0.0 }
 0x1d1   : > { %v873_v24 = vpop.f32.mrf.mxu3 }
 0x1d2   : > { %751 = vst [vmem:[%s1722_s28 + $0x18] sm:$0xff] %v735_v6  ;;  %v874_v25 = vadd.f32 %v873_v24, %v600_v12 }
 0x1d4   : > { %v917_v61 = vmax.f32 %v874_v25, 0.0 }
 0x1d5   : > { %v696_v4 = vpop.f32.mrf.mxu1 }
 0x1d6   : > { %1132 = vst [vmem:[%s1722_s28 + $0x50] sm:$0xff] %v917_v61  ;;  %v697_v27 = vadd.f32 %v696_v4, %v610_v26 }
 0x1d8   : > { %v736_v28 = vmax.f32 %v697_v27, 0.0 }
 0x1d9   : > { %v876_v59 = vpop.f32.mrf.mxu3 }
 0x1da   : > { %752 = vst [vmem:[%s1722_s28 + $0x20] sm:$0xff] %v736_v28  ;;  %v877_v29 = vadd.f32 %v876_v59, %v605_v22 }
 0x1dc   : > { %v918_v30 = vmax.f32 %v877_v29, 0.0 }
 0x1dd   : > { %v699_v31 = vpop.f32.mrf.mxu1 }
 0x1de   : > { %1133 = vst [vmem:[%s1722_s28 + $0x58] sm:$0xff] %v918_v30  ;;  %v700_v57 = vadd.f32 %v699_v31, %v615_v2 }
 0x1e0   : > { %v737_v32 = vmax.f32 %v700_v57, 0.0 }
 0x1e1   : > { %v879_v0 = vpop.f32.mrf.mxu3 }
 0x1e2   : > { %753 = vst [vmem:[%s1722_s28 + $0x28] sm:$0xff] %v737_v32  ;;  %v880_v33 = vadd.f32 %v879_v0, %v610_v26 }
 0x1e4   : > { %v919_v55 = vmax.f32 %v880_v33, 0.0 }
 0x1e5   : > { %v702_v35 = vpop.f32.mrf.mxu1 }
 0x1e6   : > { %1134 = vst [vmem:[%s1722_s28 + $0x60] sm:$0xff] %v919_v55  ;;  %v703_v62 = vadd.f32 %v702_v35, %v620_v34 }
 0x1e8   : > { %v738_v53 = vmax.f32 %v703_v62, 0.0 }
 0x1e9   : > { %v882_v36 = vpop.f32.mrf.mxu3 }
 0x1ea   : > { %754 = vst [vmem:[%s1722_s28 + $0x30] sm:$0xff] %v738_v53  ;;  %v883_v60 = vadd.f32 %v882_v36, %v615_v2 }
 0x1ec   : > { %v920_v37 = vmax.f32 %v883_v60, 0.0 }
 0x1ed   : > { %v705_v38 = vpop.f32.mrf.mxu1 }
 0x1ee   : > { %1135 = vst [vmem:[%s1722_s28 + $0x68] sm:$0xff] %v920_v37  ;;  %v706_v56 = vadd.f32 %v705_v38, %v625_v58 }
 0x1f0   : > { %v739_v39 = vmax.f32 %v706_v56, 0.0 }
 0x1f1   : > { %v885_v40 = vpop.f32.mrf.mxu3 }
 0x1f2   : > { %755 = vst [vmem:[%s1722_s28 + $0x38] sm:$0xff] %v739_v39  ;;  %v886_v54 = vadd.f32 %v885_v40, %v620_v34 }
 0x1f4   : > { %v921_v41 = vmax.f32 %v886_v54, 0.0 }
 0x1f5   : > { %v708_v43 = vpop.f32.mrf.mxu1 }
 0x1f6   : > { %1136 = vst [vmem:[%s1722_s28 + $0x70] sm:$0xff] %v921_v41  ;;  %v709_v44 = vadd.f32 %v708_v43, %v630_v42 }
 0x1f8   : > { %v740_v45 = vmax.f32 %v709_v44, 0.0 }
 0x1f9   : > { %v888_v46 = vpop.f32.mrf.mxu3 }
 0x1fa   : > { %756 = vst [vmem:[%s1752_s25] sm:$0xff] %v740_v45  ;;  %v889_v47 = vadd.f32 %v888_v46, %v625_v58 }
 0x1fc   : > { %v922_v48 = vmax.f32 %v889_v47, 0.0 }
 0x1fd   : > { %v711_v50 = vpop.f32.mrf.mxu1 }
 0x1fe   : > { %1137 = vst [vmem:[%s1722_s28 + $0x78] sm:$0xff] %v922_v48  ;;  %v712_v51 = vadd.f32 %v711_v50, %v635_v49 }
 0x1ff   : > { %1262 = shalt.err (!%p1259_p5)
}
 0x200   : > { %s1332_s28 = smov 128   ;;  %s1333_s10 = smov 256   ;;  %v741_v52 = vmax.f32 %v712_v51, 0.0  ;;  %v640_v13 = vpop.permute.xlu2 %639  ;;  %v645_v18 = vpop.permute.xlu0 %644 }
 0x201   : > { %s1334_s11 = smov 8   ;;  %v891_v9 = vpop.f32.mrf.mxu3  ;;  %v650_v8 = vpop.permute.xlu1 %649  ;;  %s982_s15 = sshll.u32 %s1752_s25, 4  ;;  %s983_s15 = int_to_ptr.vmem [resolvable:$true] %s982_s15 }
 0x202   : > { %1184 = dma.vmem_to_hbm [thread:$0]  (%p1408_p6), %s967_s12, 2048, %s969_s13, %s950_s14, %s1332_s28, %s1333_s10, %s1334_s11   ;;  %v892_v11 = vadd.f32 %v891_v9, %v630_v42 }
 0x203   : > { %757 = vst [vmem:[%s1752_s25 + $0x8] sm:$0xff] %v741_v52  ;;  %s981_s14 = scalar_lea.hbm %s1829_s6, %s1740_s29  ;;  %s955_s17 = scalar_lea.sflag [#allocation6], %s1430_s18 }
 0x204   : > { %v923_v7 = vmax.f32 %v892_v11, 0.0  ;;  %s984_s16 = sshll.u32 %s981_s14, 4  ;;  %s1283_s29 = scalar_lea.hbm %s1829_s6, 256  ;;  %s985_s16 = int_to_ptr.hbm [resolvable:$true] %s984_s16 }
 0x205   : > { %v714_v14 = vpop.f32.mrf.mxu1  ;;  %s1277_s19 = sshra.s32 %s985_s16, 4  ;;  %s1278_s19 = int_to_ptr.hbm [resolvable:$true] %s1277_s19 }
 0x206   : > { %1138 = vst [vmem:[%s1752_s25 + $0x40] sm:$0xff] %v923_v7  ;;  %v715_v15 = vadd.f32 %v714_v14, %v640_v13  ;;  %s1279_s20 = scalar_lea.hbm %s1278_s19, 128  ;;  %p1284_p12 = scmp.lt.s32.totalorder %s1278_s19, %s1829_s6 }
 0x207   : > { %p1280_p7 = scmp.ne.s32.totalorder %s1278_s19, %s1279_s20  ;;  %p1285_p13 = scmp.lt.s32.totalorder %s1283_s29, %s1279_s20 }
 0x208   : > { %v742_v16 = vmax.f32 %v715_v15, 0.0  ;;  %v655_v61 = vpop.permute.xlu2 %654  ;;  %v660_v30 = vpop.permute.xlu0 %659 }
 0x209   : > { %v894_v5 = vpop.f32.mrf.mxu3  ;;  %v665_v55 = vpop.permute.xlu1 %664  ;;  %p1281_p10 = pnand %p1280_p7, %p1408_p6  ;;  %p1286_p0 = por %p1285_p13, %p1284_p12 }
 0x20a   : > { %758 = vst [vmem:[%s1752_s25 + $0x10] sm:$0xff] %v742_v16  ;;  %v895_v12 = vadd.f32 %v894_v5, %v635_v49 }
 0x20b   : > { %p1282_p11 = pneg %p1281_p10 }
 0x20c   : > { %v924_v17 = vmax.f32 %v895_v12, 0.0 }
 0x20d   : > { %v717_v3 = vpop.f32.mrf.mxu1  ;;  %p1287_p1 = pnand %p1286_p0, %p1282_p11 }
 0x20e   : > { %1139 = vst [vmem:[%s1752_s25 + $0x48] sm:$0xff] %v924_v17  ;;  %v718_v19 = vadd.f32 %v717_v3, %v645_v18 }
 0x210   : > { %v743_v10 = vmax.f32 %v718_v19, 0.0 }
 0x211   : > { %v897_v20 = vpop.f32.mrf.mxu3 }
 0x212   : > { %759 = vst [vmem:[%s1752_s25 + $0x18] sm:$0xff] %v743_v10  ;;  %v898_v1 = vadd.f32 %v897_v20, %v640_v13 }
 0x214   : > { %v925_v21 = vmax.f32 %v898_v1, 0.0 }
 0x215   : > { %v720_v22 = vpop.f32.mrf.mxu1 }
 0x216   : > { %1140 = vst [vmem:[%s1752_s25 + $0x50] sm:$0xff] %v925_v21  ;;  %v721_v63 = vadd.f32 %v720_v22, %v650_v8 }
 0x218   : > { %v744_v23 = vmax.f32 %v721_v63, 0.0 }
 0x219   : > { %v900_v6 = vpop.f32.mrf.mxu3 }
 0x21a   : > { %760 = vst [vmem:[%s1752_s25 + $0x20] sm:$0xff] %v744_v23  ;;  %v901_v24 = vadd.f32 %v900_v6, %v645_v18 }
 0x21c   : > { %v926_v25 = vmax.f32 %v901_v24, 0.0 }
 0x21d   : > { %v723_v26 = vpop.f32.mrf.mxu1 }
 0x21e   : > { %1141 = vst [vmem:[%s1752_s25 + $0x58] sm:$0xff] %v926_v25  ;;  %v724_v4 = vadd.f32 %v723_v26, %v655_v61 }
 0x220   : > { %v745_v27 = vmax.f32 %v724_v4, 0.0 }
 0x221   : > { %v903_v28 = vpop.f32.mrf.mxu3 }
 0x222   : > { %761 = vst [vmem:[%s1752_s25 + $0x28] sm:$0xff] %v745_v27  ;;  %v904_v59 = vadd.f32 %v903_v28, %v650_v8 }
 0x224   : > { %v927_v29 = vmax.f32 %v904_v59, 0.0 }
 0x225   : > { %v726_v2 = vpop.f32.mrf.mxu1 }
 0x226   : > { %1142 = vst [vmem:[%s1752_s25 + $0x60] sm:$0xff] %v927_v29  ;;  %v727_v31 = vadd.f32 %v726_v2, %v660_v30 }
 0x228   : > { %v746_v57 = vmax.f32 %v727_v31, 0.0 }
 0x229   : > { %v906_v32 = vpop.f32.mrf.mxu3 }
 0x22a   : > { %762 = vst [vmem:[%s1752_s25 + $0x30] sm:$0xff] %v746_v57  ;;  %v907_v0 = vadd.f32 %v906_v32, %v655_v61 }
 0x22c   : > { %v928_v33 = vmax.f32 %v907_v0, 0.0 }
 0x22d   : > { %v729_v34 = vpop.f32.mrf.mxu1 }
 0x22e   : > { %1143 = vst [vmem:[%s1752_s25 + $0x68] sm:$0xff] %v928_v33  ;;  %v730_v35 = vadd.f32 %v729_v34, %v665_v55 }
 0x230   : > { %v747_v62 = vmax.f32 %v730_v35, 0.0 }
 0x231   : > { %v909_v53 = vpop.f32.mrf.mxu3 }
 0x232   : > { %763 = vst [vmem:[%s1752_s25 + $0x38] sm:$0xff] %v747_v62  ;;  %v910_v36 = vadd.f32 %v909_v53, %v660_v30 }
 0x234   : > { %v929_v60 = vmax.f32 %v910_v36, 0.0 }
 0x236   : > { %1144 = vst [vmem:[%s1752_s25 + $0x70] sm:$0xff] %v929_v60 }
 0x239   : > { %v912_v37 = vpop.f32.mrf.mxu3 }
 0x23a   : > { %v913_v58 = vadd.f32 %v912_v37, %v665_v55 }
 0x23c   : > { %v930_v38 = vmax.f32 %v913_v58, 0.0 }
 0x23e   : > { %1145 = vst [vmem:[%s1752_s25 + $0x78] sm:$0xff] %v930_v38 }
 0x23f   : > { %1290 = shalt.err (!%p1287_p1)
}
 0x240   : > { %1185 = dma.vmem_to_hbm [thread:$0]  (%p1408_p6), %s983_s15, 2048, %s985_s16, %s955_s17, %s1332_s28, %s1333_s10, %s1334_s11  }
 0x241 PF: > { %s999_s18 = sand.u32 1, %s1317_s21   ;;  %p1189_p2 = pnand %p1088_p9, %p1412_p8 }
 0x242   : > { %s1000_s25 = scalar_lea.sflag [#allocation4], %s999_s18 }
 0x243   : > { %p1190_p3 = pneg %p1189_p2 }
 0x245   : > { %1308 = dma.done.wait (%p1190_p3), %s1000_s25, 2048  }
 0x246   : > { %1310 = vsyncadd (%p1190_p3), %s1000_s25, 4294965248  ;;  %s1010_s14 = scalar_lea.sflag [#allocation6], %s999_s18 }
 0x247   : > { %1312 = dma.done.wait (%p1190_p3), %s1010_s14, 2048  }
 0x248   : > { %1314 = vsyncadd (%p1190_p3), %s1010_s14, 4294965248  ;;  %p20_p6 = scmp.ge.s32.totalorder %s1393_s27, 4   ;;  %s1832_s21 = smov %s1321_s22 }
 0x249   : > { %s1833_s22 = smov %s1325_s23  ;;  %s1834_s23 = smov %s1406_s30 }
 0x24a   : > { %s1835_s24 = smov %s1393_s27  ;;  %22 = sbr.rel (!%p20_p6) target bundleno = 5 (0x5), region = 141 }
 0x24f   :  { %1016 = vsyncpa [#allocation4], 1 }
 0x250   :  { %1018 = vsyncpa [#allocation4 + $0x1], 1 }
 0x251   :  { %1019 = vsyncpa [#allocation6], 1 }
 0x252   :  { %1021 = vsyncpa [#allocation6 + $0x1], 1 }

</bundles_post_ra>
